<compile_context>
chip_gen: v6e
topology: v6e:2x2x1
jax: 0.10.0
libtpu: 0.0.40
codegen_flags: <defaults>
</compile_context>

<pallas_src>
import functools

import jax
import jax.numpy as jnp
from jax import lax
from jax.experimental import pallas as pl
from jax.experimental.pallas import tpu as pltpu


def _depth_head_kernel(x_ref, w_ref, b_ref, o_ref, *, CC, TH, H, W):
    """One grid step: accumulate one CC-channel chunk into the output image.

    x_ref: (CC, H, W)   VMEM  unpadded activation channel chunk
    w_ref: (9*C,)       SMEM  folded 3x3 weights, flat [c, dy, dx] (f32)
    b_ref: (1,)         SMEM  folded bias (f32)
    o_ref: (H, W)       VMEM  f32 output, resident across the channel axis
    """
    k = pl.program_id(1)
    c_base = k * CC
    n_strips = H // TH

    # First channel chunk of each image: initialise the output with the bias.
    @pl.when(k == 0)
    def _init():
        o_ref[...] = jnp.zeros((H, W), jnp.float32) + b_ref[0]

    # Loop-invariant constants, hoisted once per grid step.
    zcol = jnp.zeros((TH, 1), jnp.float32)
    zrow = jnp.zeros((1, W), jnp.float32)

    for c in range(CC):
        # Folded weights for this channel: 9 SMEM scalar reads once per grid
        # step (closed over by the strip loop below, not re-read per strip).
        w = [[w_ref[(c_base + c) * 9 + dy * 3 + dx] for dx in range(3)]
             for dy in range(3)]

        def strip_body(r, carry, c=c, w=w):
            row0 = pl.multiple_of(r * TH, TH)

            # Single aligned load (and single f32 convert) per (channel, strip).
            xc = x_ref[c, pl.ds(row0, TH), :].astype(jnp.float32)      # (TH, W)

            # Vertical halo rows, zeroed at the image top / bottom.
            top_i = jnp.maximum(row0 - 1, 0)
            bot_i = jnp.minimum(row0 + TH, H - 1)
            top = jnp.where(row0 == 0, zrow,
                            x_ref[c, pl.ds(top_i, 1), :].astype(jnp.float32))
            bot = jnp.where(row0 + TH == H, zrow,
                            x_ref[c, pl.ds(bot_i, 1), :].astype(jnp.float32))

            # dy-shifted windows derived from the single strip load
            # (sublane shifts in-register, no extra VMEM reloads/converts).
            xu = jnp.concatenate([top, xc[:TH - 1, :]], axis=0)        # row r-1
            xd = jnp.concatenate([xc[1:, :], bot], axis=0)             # row r+1

            # Merge the three dy taps per dx column first, then apply the
            # horizontal shift + zero edge column once per dx.
            s_l = w[0][0] * xu + w[1][0] * xc + w[2][0] * xd
            contrib = jnp.concatenate([zcol, s_l[:, :W - 1]], axis=1)  # col j-1
            s_c = w[0][1] * xu + w[1][1] * xc + w[2][1] * xd
            contrib = contrib + s_c                                    # col j
            s_r = w[0][2] * xu + w[1][2] * xc + w[2][2] * xd
            contrib = contrib + jnp.concatenate([s_r[:, 1:], zcol], axis=1)

            o_ref[pl.ds(row0, TH), :] = o_ref[pl.ds(row0, TH), :] + contrib
            return carry

        lax.fori_loop(0, n_strips, strip_body, 0)


def _largest_divisor_leq(n, cap):
    for d in range(min(n, cap), 0, -1):
        if n % d == 0:
            return d
    return 1


def _pick_row_strip(H, cap=16):
    # Prefer a sublane-aligned (multiple of 8) divisor of H; fall back to any
    # divisor, then to the whole image.
    for d in range(min(H, cap), 1, -1):
        if H % d == 0 and d % 8 == 0:
            return d
    d = _largest_divisor_leq(H, cap)
    return d if d >= 2 else H


def depth_head_forward(z, w1, b1, w2, b2, *, filters, H=288, W=384,
                       cc_chunk=None, row_strip=None, activation_dtype=None):
    """DepthHead forward.

    z : (bs, filters*H*W)  (anything reshapable to NCHW, like torch .reshape)
    w1: (3, 3, Cin, Cout)  3x3 conv weights       b1: (Cout,)
    w2: (Cout, 1)          1x1 conv weights       b2: (1,)
    activation_dtype: None keeps z's dtype (no extra HBM cast pass). Passing
    jnp.bfloat16 quantizes the activations before the conv (cheaper DMA, but
    not bit-identical to the PyTorch f32 conv).
    Returns (bs, 1, H, W) float32, matching the PyTorch module.
    """
    bs = z.shape[0]
    C = filters
    assert H >= 2 and W >= 2

    # ---- Fold the 1x1 conv into the 3x3 conv (exact: both linear). ----
    w_eff = jnp.einsum('yxio,o->yxi', w1.astype(jnp.float32),
                       w2[:, 0].astype(jnp.float32))               # (3, 3, C)
    b_eff = (jnp.dot(b1.astype(jnp.float32), w2[:, 0].astype(jnp.float32))
             + b2.astype(jnp.float32).reshape(())).reshape(1)      # (1,)
    # Flatten weights to 1-D [c, dy, dx] for compact SMEM + scalar indexing.
    w_flat = jnp.transpose(w_eff, (2, 0, 1)).reshape(C * 9)

    # ---- Unflatten to NCHW (BaseHead.unflatten); no padding, no cast. ----
    x = z.reshape(bs, C, H, W)
    if activation_dtype is not None and x.dtype != activation_dtype:
        x = x.astype(activation_dtype)     # explicit opt-in only (extra pass)
    itemsize = jnp.dtype(x.dtype).itemsize

    # ---- Tiling parameters (sized against a conservative VMEM budget). ----
    Hp = -(-H // 8) * 8                    # sublane-padded rows
    Wp = -(-W // 128) * 128                # lane-padded row width
    out_slab = Hp * Wp * 4
    budget = 44 * 2**20                    # fits v7x's 64 MiB with headroom

    if row_strip is None:
        row_strip = _pick_row_strip(H)
    assert H % row_strip == 0, (H, row_strip)

    if cc_chunk is None:
        cap = 16 if itemsize >= 4 else 32
        cc_chunk = _largest_divisor_leq(C, cap)
        while (cc_chunk > 1 and
               2 * cc_chunk * Hp * Wp * itemsize + 2 * out_slab > budget):
            cc_chunk = _largest_divisor_leq(C, cc_chunk - 1)
    assert C % cc_chunk == 0, (C, cc_chunk)
    n_cc = C // cc_chunk

    in_slab = cc_chunk * Hp * Wp * itemsize
    vmem_limit = int(min(48 * 2**20,
                         max(32 * 2**20,
                             2 * in_slab + 2 * out_slab + (4 << 20))))

    kernel = functools.partial(_depth_head_kernel, CC=cc_chunk, TH=row_strip,
                               H=H, W=W)

    out = pl.pallas_call(
        kernel,
        out_shape=jax.ShapeDtypeStruct((bs, 1, H, W), jnp.float32),
        grid_spec=pltpu.PrefetchScalarGridSpec(
            num_scalar_prefetch=0,
            grid=(bs, n_cc),
            in_specs=[
                # Batch dim squeezed; channel chunks auto-pipelined (2-deep).
                pl.BlockSpec((None, cc_chunk, H, W),
                             lambda b, k: (b, k, 0, 0)),
                # Tiny folded weights / bias live in SMEM (scalar reads).
                pl.BlockSpec(memory_space=pltpu.MemorySpace.SMEM),
                pl.BlockSpec(memory_space=pltpu.MemorySpace.SMEM),
            ],
            # Lane-dense (H, W) output block, resident across channel chunks.
            out_specs=pl.BlockSpec((None, None, H, W),
                                   lambda b, k: (b, 0, 0, 0)),
        ),
        compiler_params=pltpu.CompilerParams(
            dimension_semantics=("parallel", "arbitrary"),
            vmem_limit_bytes=vmem_limit),
    )(x, w_flat, b_eff)

    return out


def _reference(z, w1, b1, w2, b2, *, filters, H, W):
    # Pure-JAX reference matching the PyTorch semantics (NCHW convs).
    bs = z.shape[0]
    x = z.reshape(bs, filters, H, W).astype(jnp.float32)
    w1_oihw = jnp.transpose(w1, (3, 2, 0, 1))                  # (Cout, Cin, 3, 3)
    y = lax.conv_general_dilated(
        x, w1_oihw, window_strides=(1, 1), padding="SAME",
        dimension_numbers=("NCHW", "OIHW", "NCHW"))
    y = y + b1.reshape(1, filters, 1, 1)
    w2_oihw = jnp.transpose(w2, (1, 0)).reshape(1, filters, 1, 1)
    y = lax.conv_general_dilated(
        y, w2_oihw, window_strides=(1, 1), padding="VALID",
        dimension_numbers=("NCHW", "OIHW", "NCHW"))
    y = y + b2.reshape(1, 1, 1, 1)
    return y


if __name__ == "__main__":
    # Small, module-consistent shapes (the real module hardcodes 288x384 and
    # filters=64; small sizes keep the example light while still exercising
    # >1 channel chunk, >1 row strip and all four image borders).
    bs, filters, H, W = 2, 4, 16, 16

    key = jax.random.PRNGKey(0)
    k_z, k_w1, k_b1, k_w2, k_b2 = jax.random.split(key, 5)

    z = jax.random.normal(k_z, (bs, filters * H * W), dtype=jnp.float32)
    w1 = jax.random.normal(k_w1, (3, 3, filters, filters), jnp.float32) * 0.1
    b1 = jax.random.normal(k_b1, (filters,), jnp.float32) * 0.1
    w2 = jax.random.normal(k_w2, (filters, 1), jnp.float32) * 0.1
    b2 = jax.random.normal(k_b2, (1,), jnp.float32) * 0.1

    ref = _reference(z, w1, b1, w2, b2, filters=filters, H=H, W=W)

    # f32 activations (no wrapper-side pad or cast): tight check.
    out = depth_head_forward(z, w1, b1, w2, b2, filters=filters, H=H, W=W,
                             cc_chunk=2, row_strip=8)
    out = jax.block_until_ready(out)
    assert out.shape == (bs, 1, H, W), out.shape
    assert jnp.allclose(out, ref, atol=1e-4, rtol=1e-4), "f32 mismatch vs reference"

    # bf16 activations: only exercised with an already-bf16 input (the wrapper
    # never inserts its own cast pass); looser tolerance vs the f32 reference.
    z_bf16 = z.astype(jnp.bfloat16)
    out_bf16 = depth_head_forward(z_bf16, w1, b1, w2, b2, filters=filters,
                                  H=H, W=W, cc_chunk=2, row_strip=8)
    out_bf16 = jax.block_until_ready(out_bf16)
    assert jnp.allclose(out_bf16, ref, atol=3e-2, rtol=3e-2), "bf16 mismatch vs reference"

    print("KERNEL_OK")
</pallas_src>

<mosaic_0001>
module attributes {stable_mosaic.version = 11 : i64} {
  func.func @_depth_head_kernel(%arg0: i32, %arg1: i32, %arg2: memref<1x2x16x16xf32, #tpu.memory_space<vmem>>, %arg3: memref<36xf32, #tpu.memory_space<smem>>, %arg4: memref<1xf32, #tpu.memory_space<smem>>, %arg5: memref<1x1x16x16xf32, #tpu.memory_space<vmem>>) attributes {dimension_semantics = [#tpu.dimension_semantics<parallel>, #tpu.dimension_semantics<arbitrary>], iteration_bounds = array<i64: 2, 2>, scalar_prefetch = 0 : i64, scratch_operands = 0 : i64, tpu.core_type = #tpu.core_type<tc>, window_params = [{transform_indices = @transform_0, window_bounds = array<i64: 1, 2, 16, 16>}, {transform_indices = @transform_1, window_bounds = array<i64: 36>}, {transform_indices = @transform_2, window_bounds = array<i64: 1>}, {transform_indices = @transform_3, window_bounds = array<i64: 1, 1, 16, 16>}]} {
    %c2_i32 = arith.constant 2 : i32
    %0 = arith.muli %arg1, %c2_i32 : i32
    %c0_i32 = arith.constant 0 : i32
    %1 = arith.cmpi eq, %arg1, %c0_i32 : i32
    %2 = arith.extui %1 : i1 to i32
    %c0_i32_0 = arith.constant 0 : i32
    %3 = arith.cmpi ne, %2, %c0_i32_0 : i32
    scf.if %3 {
      %cst_78 = arith.constant 0.000000e+00 : f32
      %116 = vector.broadcast %cst_78 : f32 to vector<16x16xf32>
      %c0 = arith.constant 0 : index
      %117 = memref.load %arg4[%c0] : memref<1xf32, #tpu.memory_space<smem>>
      %118 = vector.broadcast %117 : f32 to vector<16x16xf32>
      %119 = arith.addf %116, %118 : vector<16x16xf32>
      %c0_79 = arith.constant 0 : index
      %c0_80 = arith.constant 0 : index
      %c0_81 = arith.constant 0 : index
      %c0_82 = arith.constant 0 : index
      %120 = vector.load %arg5[%c0_79, %c0_80, %c0_81, %c0_82] : memref<1x1x16x16xf32, #tpu.memory_space<vmem>>, vector<1x1x16x16xf32>
      %121 = vector.shape_cast %120 : vector<1x1x16x16xf32> to vector<16x16xf32>
      %122 = vector.shape_cast %119 : vector<16x16xf32> to vector<1x1x16x16xf32>
      tpu.vector_store %arg5[%c0_79, %c0_80, %c0_81, %c0_82], %122 {strides = array<i32>} : memref<1x1x16x16xf32, #tpu.memory_space<vmem>>, vector<1x1x16x16xf32>,
    } else {
    }
    %cst = arith.constant 0.000000e+00 : f32
    %4 = vector.broadcast %cst : f32 to vector<8x1xf32>
    %cst_1 = arith.constant 0.000000e+00 : f32
    %5 = vector.broadcast %cst_1 : f32 to vector<1x16xf32>
    %c0_i32_2 = arith.constant 0 : i32
    %6 = arith.addi %0, %c0_i32_2 : i32
    %c9_i32 = arith.constant 9 : i32
    %7 = arith.muli %6, %c9_i32 : i32
    %c0_i32_3 = arith.constant 0 : i32
    %8 = arith.addi %7, %c0_i32_3 : i32
    %c0_i32_4 = arith.constant 0 : i32
    %9 = arith.addi %8, %c0_i32_4 : i32
    %10 = arith.index_cast %9 : i32 to index
    %11 = memref.load %arg3[%10] : memref<36xf32, #tpu.memory_space<smem>>
    %c0_i32_5 = arith.constant 0 : i32
    %12 = arith.addi %0, %c0_i32_5 : i32
    %c9_i32_6 = arith.constant 9 : i32
    %13 = arith.muli %12, %c9_i32_6 : i32
    %c0_i32_7 = arith.constant 0 : i32
    %14 = arith.addi %13, %c0_i32_7 : i32
    %c1_i32 = arith.constant 1 : i32
    %15 = arith.addi %14, %c1_i32 : i32
    %16 = arith.index_cast %15 : i32 to index
    %17 = memref.load %arg3[%16] : memref<36xf32, #tpu.memory_space<smem>>
    %c0_i32_8 = arith.constant 0 : i32
    %18 = arith.addi %0, %c0_i32_8 : i32
    %c9_i32_9 = arith.constant 9 : i32
    %19 = arith.muli %18, %c9_i32_9 : i32
    %c0_i32_10 = arith.constant 0 : i32
    %20 = arith.addi %19, %c0_i32_10 : i32
    %c2_i32_11 = arith.constant 2 : i32
    %21 = arith.addi %20, %c2_i32_11 : i32
    %22 = arith.index_cast %21 : i32 to index
    %23 = memref.load %arg3[%22] : memref<36xf32, #tpu.memory_space<smem>>
    %c0_i32_12 = arith.constant 0 : i32
    %24 = arith.addi %0, %c0_i32_12 : i32
    %c9_i32_13 = arith.constant 9 : i32
    %25 = arith.muli %24, %c9_i32_13 : i32
    %c3_i32 = arith.constant 3 : i32
    %26 = arith.addi %25, %c3_i32 : i32
    %c0_i32_14 = arith.constant 0 : i32
    %27 = arith.addi %26, %c0_i32_14 : i32
    %28 = arith.index_cast %27 : i32 to index
    %29 = memref.load %arg3[%28] : memref<36xf32, #tpu.memory_space<smem>>
    %c0_i32_15 = arith.constant 0 : i32
    %30 = arith.addi %0, %c0_i32_15 : i32
    %c9_i32_16 = arith.constant 9 : i32
    %31 = arith.muli %30, %c9_i32_16 : i32
    %c3_i32_17 = arith.constant 3 : i32
    %32 = arith.addi %31, %c3_i32_17 : i32
    %c1_i32_18 = arith.constant 1 : i32
    %33 = arith.addi %32, %c1_i32_18 : i32
    %34 = arith.index_cast %33 : i32 to index
    %35 = memref.load %arg3[%34] : memref<36xf32, #tpu.memory_space<smem>>
    %c0_i32_19 = arith.constant 0 : i32
    %36 = arith.addi %0, %c0_i32_19 : i32
    %c9_i32_20 = arith.constant 9 : i32
    %37 = arith.muli %36, %c9_i32_20 : i32
    %c3_i32_21 = arith.constant 3 : i32
    %38 = arith.addi %37, %c3_i32_21 : i32
    %c2_i32_22 = arith.constant 2 : i32
    %39 = arith.addi %38, %c2_i32_22 : i32
    %40 = arith.index_cast %39 : i32 to index
    %41 = memref.load %arg3[%40] : memref<36xf32, #tpu.memory_space<smem>>
    %c0_i32_23 = arith.constant 0 : i32
    %42 = arith.addi %0, %c0_i32_23 : i32
    %c9_i32_24 = arith.constant 9 : i32
    %43 = arith.muli %42, %c9_i32_24 : i32
    %c6_i32 = arith.constant 6 : i32
    %44 = arith.addi %43, %c6_i32 : i32
    %c0_i32_25 = arith.constant 0 : i32
    %45 = arith.addi %44, %c0_i32_25 : i32
    %46 = arith.index_cast %45 : i32 to index
    %47 = memref.load %arg3[%46] : memref<36xf32, #tpu.memory_space<smem>>
    %c0_i32_26 = arith.constant 0 : i32
    %48 = arith.addi %0, %c0_i32_26 : i32
    %c9_i32_27 = arith.constant 9 : i32
    %49 = arith.muli %48, %c9_i32_27 : i32
    %c6_i32_28 = arith.constant 6 : i32
    %50 = arith.addi %49, %c6_i32_28 : i32
    %c1_i32_29 = arith.constant 1 : i32
    %51 = arith.addi %50, %c1_i32_29 : i32
    %52 = arith.index_cast %51 : i32 to index
    %53 = memref.load %arg3[%52] : memref<36xf32, #tpu.memory_space<smem>>
    %c0_i32_30 = arith.constant 0 : i32
    %54 = arith.addi %0, %c0_i32_30 : i32
    %c9_i32_31 = arith.constant 9 : i32
    %55 = arith.muli %54, %c9_i32_31 : i32
    %c6_i32_32 = arith.constant 6 : i32
    %56 = arith.addi %55, %c6_i32_32 : i32
    %c2_i32_33 = arith.constant 2 : i32
    %57 = arith.addi %56, %c2_i32_33 : i32
    %58 = arith.index_cast %57 : i32 to index
    %59 = memref.load %arg3[%58] : memref<36xf32, #tpu.memory_space<smem>>
    %c0_i32_34 = arith.constant 0 : i32
    %c2_i32_35 = arith.constant 2 : i32
    %60 = arith.addi %c0_i32_34, %c2_i32_35 : i32
    %c1_i32_36 = arith.constant 1 : i32
    scf.for %arg6 = %c0_i32_34 to %60 step %c1_i32_36  : i32 {
      %c8_i32 = arith.constant 8 : i32
      %116 = arith.muli %arg6, %c8_i32 : i32
      %117 = tpu.assume_multiple %116, 8 : i32
      %c0 = arith.constant 0 : index
      %c0_78 = arith.constant 0 : index
      %118 = arith.index_cast %117 : i32 to index
      %c0_79 = arith.constant 0 : index
      %119 = vector.load %arg2[%c0, %c0_78, %118, %c0_79] : memref<1x2x16x16xf32, #tpu.memory_space<vmem>>, vector<1x1x8x16xf32>
      %120 = vector.shape_cast %119 : vector<1x1x8x16xf32> to vector<8x16xf32>
      %c1_i32_80 = arith.constant 1 : i32
      %121 = arith.subi %117, %c1_i32_80 : i32
      %c0_i32_81 = arith.constant 0 : i32
      %122 = arith.maxsi %121, %c0_i32_81 : i32
      %c8_i32_82 = arith.constant 8 : i32
      %123 = arith.addi %117, %c8_i32_82 : i32
      %c15_i32 = arith.constant 15 : i32
      %124 = arith.minsi %123, %c15_i32 : i32
      %c0_i32_83 = arith.constant 0 : i32
      %125 = arith.cmpi eq, %117, %c0_i32_83 : i32
      %c0_84 = arith.constant 0 : index
      %c0_85 = arith.constant 0 : index
      %126 = arith.index_cast %122 : i32 to index
      %c0_86 = arith.constant 0 : index
      %127 = vector.load %arg2[%c0_84, %c0_85, %126, %c0_86] : memref<1x2x16x16xf32, #tpu.memory_space<vmem>>, vector<1x1x1x16xf32>
      %128 = vector.shape_cast %127 : vector<1x1x1x16xf32> to vector<1x16xf32>
      %129 = arith.select %125, %5, %128 : vector<1x16xf32>
      %c8_i32_87 = arith.constant 8 : i32
      %130 = arith.addi %117, %c8_i32_87 : i32
      %c16_i32 = arith.constant 16 : i32
      %131 = arith.cmpi eq, %130, %c16_i32 : i32
      %c0_88 = arith.constant 0 : index
      %c0_89 = arith.constant 0 : index
      %132 = arith.index_cast %124 : i32 to index
      %c0_90 = arith.constant 0 : index
      %133 = vector.load %arg2[%c0_88, %c0_89, %132, %c0_90] : memref<1x2x16x16xf32, #tpu.memory_space<vmem>>, vector<1x1x1x16xf32>
      %134 = vector.shape_cast %133 : vector<1x1x1x16xf32> to vector<1x16xf32>
      %135 = arith.select %131, %5, %134 : vector<1x16xf32>
      %136 = vector.extract_strided_slice %120 {offsets = [0, 0], sizes = [7, 16], strides = [1, 1]} : vector<8x16xf32> to vector<7x16xf32>
      %137 = tpu.concatenate %129, %136 in 0 : vector<1x16xf32>, vector<7x16xf32> -> vector<8x16xf32>
      %138 = vector.extract_strided_slice %120 {offsets = [1, 0], sizes = [7, 16], strides = [1, 1]} : vector<8x16xf32> to vector<7x16xf32>
      %139 = tpu.concatenate %138, %135 in 0 : vector<7x16xf32>, vector<1x16xf32> -> vector<8x16xf32>
      %140 = vector.broadcast %11 : f32 to vector<8x16xf32>
      %141 = arith.mulf %140, %137 : vector<8x16xf32>
      %142 = vector.broadcast %29 : f32 to vector<8x16xf32>
      %143 = arith.mulf %142, %120 : vector<8x16xf32>
      %144 = arith.addf %141, %143 : vector<8x16xf32>
      %145 = vector.broadcast %47 : f32 to vector<8x16xf32>
      %146 = arith.mulf %145, %139 : vector<8x16xf32>
      %147 = arith.addf %144, %146 : vector<8x16xf32>
      %148 = vector.extract_strided_slice %147 {offsets = [0, 0], sizes = [8, 15], strides = [1, 1]} : vector<8x16xf32> to vector<8x15xf32>
      %149 = tpu.concatenate %4, %148 in 1 : vector<8x1xf32>, vector<8x15xf32> -> vector<8x16xf32>
      %150 = vector.broadcast %17 : f32 to vector<8x16xf32>
      %151 = arith.mulf %150, %137 : vector<8x16xf32>
      %152 = vector.broadcast %35 : f32 to vector<8x16xf32>
      %153 = arith.mulf %152, %120 : vector<8x16xf32>
      %154 = arith.addf %151, %153 : vector<8x16xf32>
      %155 = vector.broadcast %53 : f32 to vector<8x16xf32>
      %156 = arith.mulf %155, %139 : vector<8x16xf32>
      %157 = arith.addf %154, %156 : vector<8x16xf32>
      %158 = arith.addf %149, %157 : vector<8x16xf32>
      %159 = vector.broadcast %23 : f32 to vector<8x16xf32>
      %160 = arith.mulf %159, %137 : vector<8x16xf32>
      %161 = vector.broadcast %41 : f32 to vector<8x16xf32>
      %162 = arith.mulf %161, %120 : vector<8x16xf32>
      %163 = arith.addf %160, %162 : vector<8x16xf32>
      %164 = vector.broadcast %59 : f32 to vector<8x16xf32>
      %165 = arith.mulf %164, %139 : vector<8x16xf32>
      %166 = arith.addf %163, %165 : vector<8x16xf32>
      %167 = vector.extract_strided_slice %166 {offsets = [0, 1], sizes = [8, 15], strides = [1, 1]} : vector<8x16xf32> to vector<8x15xf32>
      %168 = tpu.concatenate %167, %4 in 1 : vector<8x15xf32>, vector<8x1xf32> -> vector<8x16xf32>
      %169 = arith.addf %158, %168 : vector<8x16xf32>
      %c0_91 = arith.constant 0 : index
      %c0_92 = arith.constant 0 : index
      %170 = arith.index_cast %117 : i32 to index
      %c0_93 = arith.constant 0 : index
      %171 = vector.load %arg5[%c0_91, %c0_92, %170, %c0_93] : memref<1x1x16x16xf32, #tpu.memory_space<vmem>>, vector<1x1x8x16xf32>
      %172 = vector.shape_cast %171 : vector<1x1x8x16xf32> to vector<8x16xf32>
      %173 = arith.addf %172, %169 : vector<8x16xf32>
      %c0_94 = arith.constant 0 : index
      %c0_95 = arith.constant 0 : index
      %174 = arith.index_cast %117 : i32 to index
      %c0_96 = arith.constant 0 : index
      %175 = vector.load %arg5[%c0_94, %c0_95, %174, %c0_96] : memref<1x1x16x16xf32, #tpu.memory_space<vmem>>, vector<1x1x8x16xf32>
      %176 = vector.shape_cast %175 : vector<1x1x8x16xf32> to vector<8x16xf32>
      %177 = vector.shape_cast %173 : vector<8x16xf32> to vector<1x1x8x16xf32>
      tpu.vector_store %arg5[%c0_94, %c0_95, %174, %c0_96], %177 {strides = array<i32>} : memref<1x1x16x16xf32, #tpu.memory_space<vmem>>, vector<1x1x8x16xf32>,
    }
    %c2_i32_37 = arith.constant 2 : i32
    %c1_i32_38 = arith.constant 1 : i32
    %61 = arith.addi %0, %c1_i32_38 : i32
    %c9_i32_39 = arith.constant 9 : i32
    %62 = arith.muli %61, %c9_i32_39 : i32
    %c0_i32_40 = arith.constant 0 : i32
    %63 = arith.addi %62, %c0_i32_40 : i32
    %c0_i32_41 = arith.constant 0 : i32
    %64 = arith.addi %63, %c0_i32_41 : i32
    %65 = arith.index_cast %64 : i32 to index
    %66 = memref.load %arg3[%65] : memref<36xf32, #tpu.memory_space<smem>>
    %c1_i32_42 = arith.constant 1 : i32
    %67 = arith.addi %0, %c1_i32_42 : i32
    %c9_i32_43 = arith.constant 9 : i32
    %68 = arith.muli %67, %c9_i32_43 : i32
    %c0_i32_44 = arith.constant 0 : i32
    %69 = arith.addi %68, %c0_i32_44 : i32
    %c1_i32_45 = arith.constant 1 : i32
    %70 = arith.addi %69, %c1_i32_45 : i32
    %71 = arith.index_cast %70 : i32 to index
    %72 = memref.load %arg3[%71] : memref<36xf32, #tpu.memory_space<smem>>
    %c1_i32_46 = arith.constant 1 : i32
    %73 = arith.addi %0, %c1_i32_46 : i32
    %c9_i32_47 = arith.constant 9 : i32
    %74 = arith.muli %73, %c9_i32_47 : i32
    %c0_i32_48 = arith.constant 0 : i32
    %75 = arith.addi %74, %c0_i32_48 : i32
    %c2_i32_49 = arith.constant 2 : i32
    %76 = arith.addi %75, %c2_i32_49 : i32
    %77 = arith.index_cast %76 : i32 to index
    %78 = memref.load %arg3[%77] : memref<36xf32, #tpu.memory_space<smem>>
    %c1_i32_50 = arith.constant 1 : i32
    %79 = arith.addi %0, %c1_i32_50 : i32
    %c9_i32_51 = arith.constant 9 : i32
    %80 = arith.muli %79, %c9_i32_51 : i32
    %c3_i32_52 = arith.constant 3 : i32
    %81 = arith.addi %80, %c3_i32_52 : i32
    %c0_i32_53 = arith.constant 0 : i32
    %82 = arith.addi %81, %c0_i32_53 : i32
    %83 = arith.index_cast %82 : i32 to index
    %84 = memref.load %arg3[%83] : memref<36xf32, #tpu.memory_space<smem>>
    %c1_i32_54 = arith.constant 1 : i32
    %85 = arith.addi %0, %c1_i32_54 : i32
    %c9_i32_55 = arith.constant 9 : i32
    %86 = arith.muli %85, %c9_i32_55 : i32
    %c3_i32_56 = arith.constant 3 : i32
    %87 = arith.addi %86, %c3_i32_56 : i32
    %c1_i32_57 = arith.constant 1 : i32
    %88 = arith.addi %87, %c1_i32_57 : i32
    %89 = arith.index_cast %88 : i32 to index
    %90 = memref.load %arg3[%89] : memref<36xf32, #tpu.memory_space<smem>>
    %c1_i32_58 = arith.constant 1 : i32
    %91 = arith.addi %0, %c1_i32_58 : i32
    %c9_i32_59 = arith.constant 9 : i32
    %92 = arith.muli %91, %c9_i32_59 : i32
    %c3_i32_60 = arith.constant 3 : i32
    %93 = arith.addi %92, %c3_i32_60 : i32
    %c2_i32_61 = arith.constant 2 : i32
    %94 = arith.addi %93, %c2_i32_61 : i32
    %95 = arith.index_cast %94 : i32 to index
    %96 = memref.load %arg3[%95] : memref<36xf32, #tpu.memory_space<smem>>
    %c1_i32_62 = arith.constant 1 : i32
    %97 = arith.addi %0, %c1_i32_62 : i32
    %c9_i32_63 = arith.constant 9 : i32
    %98 = arith.muli %97, %c9_i32_63 : i32
    %c6_i32_64 = arith.constant 6 : i32
    %99 = arith.addi %98, %c6_i32_64 : i32
    %c0_i32_65 = arith.constant 0 : i32
    %100 = arith.addi %99, %c0_i32_65 : i32
    %101 = arith.index_cast %100 : i32 to index
    %102 = memref.load %arg3[%101] : memref<36xf32, #tpu.memory_space<smem>>
    %c1_i32_66 = arith.constant 1 : i32
    %103 = arith.addi %0, %c1_i32_66 : i32
    %c9_i32_67 = arith.constant 9 : i32
    %104 = arith.muli %103, %c9_i32_67 : i32
    %c6_i32_68 = arith.constant 6 : i32
    %105 = arith.addi %104, %c6_i32_68 : i32
    %c1_i32_69 = arith.constant 1 : i32
    %106 = arith.addi %105, %c1_i32_69 : i32
    %107 = arith.index_cast %106 : i32 to index
    %108 = memref.load %arg3[%107] : memref<36xf32, #tpu.memory_space<smem>>
    %c1_i32_70 = arith.constant 1 : i32
    %109 = arith.addi %0, %c1_i32_70 : i32
    %c9_i32_71 = arith.constant 9 : i32
    %110 = arith.muli %109, %c9_i32_71 : i32
    %c6_i32_72 = arith.constant 6 : i32
    %111 = arith.addi %110, %c6_i32_72 : i32
    %c2_i32_73 = arith.constant 2 : i32
    %112 = arith.addi %111, %c2_i32_73 : i32
    %113 = arith.index_cast %112 : i32 to index
    %114 = memref.load %arg3[%113] : memref<36xf32, #tpu.memory_space<smem>>
    %c0_i32_74 = arith.constant 0 : i32
    %c2_i32_75 = arith.constant 2 : i32
    %115 = arith.addi %c0_i32_74, %c2_i32_75 : i32
    %c1_i32_76 = arith.constant 1 : i32
    scf.for %arg6 = %c0_i32_74 to %115 step %c1_i32_76  : i32 {
      %c8_i32 = arith.constant 8 : i32
      %116 = arith.muli %arg6, %c8_i32 : i32
      %117 = tpu.assume_multiple %116, 8 : i32
      %c0 = arith.constant 0 : index
      %c1 = arith.constant 1 : index
      %118 = arith.index_cast %117 : i32 to index
      %c0_78 = arith.constant 0 : index
      %119 = vector.load %arg2[%c0, %c1, %118, %c0_78] : memref<1x2x16x16xf32, #tpu.memory_space<vmem>>, vector<1x1x8x16xf32>
      %120 = vector.shape_cast %119 : vector<1x1x8x16xf32> to vector<8x16xf32>
      %c1_i32_79 = arith.constant 1 : i32
      %121 = arith.subi %117, %c1_i32_79 : i32
      %c0_i32_80 = arith.constant 0 : i32
      %122 = arith.maxsi %121, %c0_i32_80 : i32
      %c8_i32_81 = arith.constant 8 : i32
      %123 = arith.addi %117, %c8_i32_81 : i32
      %c15_i32 = arith.constant 15 : i32
      %124 = arith.minsi %123, %c15_i32 : i32
      %c0_i32_82 = arith.constant 0 : i32
      %125 = arith.cmpi eq, %117, %c0_i32_82 : i32
      %c0_83 = arith.constant 0 : index
      %c1_84 = arith.constant 1 : index
      %126 = arith.index_cast %122 : i32 to index
      %c0_85 = arith.constant 0 : index
      %127 = vector.load %arg2[%c0_83, %c1_84, %126, %c0_85] : memref<1x2x16x16xf32, #tpu.memory_space<vmem>>, vector<1x1x1x16xf32>
      %128 = vector.shape_cast %127 : vector<1x1x1x16xf32> to vector<1x16xf32>
      %129 = arith.select %125, %5, %128 : vector<1x16xf32>
      %c8_i32_86 = arith.constant 8 : i32
      %130 = arith.addi %117, %c8_i32_86 : i32
      %c16_i32 = arith.constant 16 : i32
      %131 = arith.cmpi eq, %130, %c16_i32 : i32
      %c0_87 = arith.constant 0 : index
      %c1_88 = arith.constant 1 : index
      %132 = arith.index_cast %124 : i32 to index
      %c0_89 = arith.constant 0 : index
      %133 = vector.load %arg2[%c0_87, %c1_88, %132, %c0_89] : memref<1x2x16x16xf32, #tpu.memory_space<vmem>>, vector<1x1x1x16xf32>
      %134 = vector.shape_cast %133 : vector<1x1x1x16xf32> to vector<1x16xf32>
      %135 = arith.select %131, %5, %134 : vector<1x16xf32>
      %136 = vector.extract_strided_slice %120 {offsets = [0, 0], sizes = [7, 16], strides = [1, 1]} : vector<8x16xf32> to vector<7x16xf32>
      %137 = tpu.concatenate %129, %136 in 0 : vector<1x16xf32>, vector<7x16xf32> -> vector<8x16xf32>
      %138 = vector.extract_strided_slice %120 {offsets = [1, 0], sizes = [7, 16], strides = [1, 1]} : vector<8x16xf32> to vector<7x16xf32>
      %139 = tpu.concatenate %138, %135 in 0 : vector<7x16xf32>, vector<1x16xf32> -> vector<8x16xf32>
      %140 = vector.broadcast %66 : f32 to vector<8x16xf32>
      %141 = arith.mulf %140, %137 : vector<8x16xf32>
      %142 = vector.broadcast %84 : f32 to vector<8x16xf32>
      %143 = arith.mulf %142, %120 : vector<8x16xf32>
      %144 = arith.addf %141, %143 : vector<8x16xf32>
      %145 = vector.broadcast %102 : f32 to vector<8x16xf32>
      %146 = arith.mulf %145, %139 : vector<8x16xf32>
      %147 = arith.addf %144, %146 : vector<8x16xf32>
      %148 = vector.extract_strided_slice %147 {offsets = [0, 0], sizes = [8, 15], strides = [1, 1]} : vector<8x16xf32> to vector<8x15xf32>
      %149 = tpu.concatenate %4, %148 in 1 : vector<8x1xf32>, vector<8x15xf32> -> vector<8x16xf32>
      %150 = vector.broadcast %72 : f32 to vector<8x16xf32>
      %151 = arith.mulf %150, %137 : vector<8x16xf32>
      %152 = vector.broadcast %90 : f32 to vector<8x16xf32>
      %153 = arith.mulf %152, %120 : vector<8x16xf32>
      %154 = arith.addf %151, %153 : vector<8x16xf32>
      %155 = vector.broadcast %108 : f32 to vector<8x16xf32>
      %156 = arith.mulf %155, %139 : vector<8x16xf32>
      %157 = arith.addf %154, %156 : vector<8x16xf32>
      %158 = arith.addf %149, %157 : vector<8x16xf32>
      %159 = vector.broadcast %78 : f32 to vector<8x16xf32>
      %160 = arith.mulf %159, %137 : vector<8x16xf32>
      %161 = vector.broadcast %96 : f32 to vector<8x16xf32>
      %162 = arith.mulf %161, %120 : vector<8x16xf32>
      %163 = arith.addf %160, %162 : vector<8x16xf32>
      %164 = vector.broadcast %114 : f32 to vector<8x16xf32>
      %165 = arith.mulf %164, %139 : vector<8x16xf32>
      %166 = arith.addf %163, %165 : vector<8x16xf32>
      %167 = vector.extract_strided_slice %166 {offsets = [0, 1], sizes = [8, 15], strides = [1, 1]} : vector<8x16xf32> to vector<8x15xf32>
      %168 = tpu.concatenate %167, %4 in 1 : vector<8x15xf32>, vector<8x1xf32> -> vector<8x16xf32>
      %169 = arith.addf %158, %168 : vector<8x16xf32>
      %c0_90 = arith.constant 0 : index
      %c0_91 = arith.constant 0 : index
      %170 = arith.index_cast %117 : i32 to index
      %c0_92 = arith.constant 0 : index
      %171 = vector.load %arg5[%c0_90, %c0_91, %170, %c0_92] : memref<1x1x16x16xf32, #tpu.memory_space<vmem>>, vector<1x1x8x16xf32>
      %172 = vector.shape_cast %171 : vector<1x1x8x16xf32> to vector<8x16xf32>
      %173 = arith.addf %172, %169 : vector<8x16xf32>
      %c0_93 = arith.constant 0 : index
      %c0_94 = arith.constant 0 : index
      %174 = arith.index_cast %117 : i32 to index
      %c0_95 = arith.constant 0 : index
      %175 = vector.load %arg5[%c0_93, %c0_94, %174, %c0_95] : memref<1x1x16x16xf32, #tpu.memory_space<vmem>>, vector<1x1x8x16xf32>
      %176 = vector.shape_cast %175 : vector<1x1x8x16xf32> to vector<8x16xf32>
      %177 = vector.shape_cast %173 : vector<8x16xf32> to vector<1x1x8x16xf32>
      tpu.vector_store %arg5[%c0_93, %c0_94, %174, %c0_95], %177 {strides = array<i32>} : memref<1x1x16x16xf32, #tpu.memory_space<vmem>>, vector<1x1x8x16xf32>,
    }
    %c2_i32_77 = arith.constant 2 : i32
    return
  }
  func.func @transform_0(%arg0: i32, %arg1: i32) -> (i32, i32, i32, i32) {
    %c0_i32 = arith.constant 0 : i32
    %c0_i32_0 = arith.constant 0 : i32
    %c0_i32_1 = arith.constant 0 : i32
    return %arg0, %arg1, %c0_i32, %c0_i32_0 : i32, i32, i32, i32
  }
  func.func @transform_1(%arg0: i32, %arg1: i32) -> i32 {
    %c0_i32 = arith.constant 0 : i32
    %c0_i32_0 = arith.constant 0 : i32
    return %c0_i32 : i32
  }
  func.func @transform_2(%arg0: i32, %arg1: i32) -> i32 {
    %c0_i32 = arith.constant 0 : i32
    %c0_i32_0 = arith.constant 0 : i32
    return %c0_i32 : i32
  }
  func.func @transform_3(%arg0: i32, %arg1: i32) -> (i32, i32, i32, i32) {
    %c0_i32 = arith.constant 0 : i32
    %c0_i32_0 = arith.constant 0 : i32
    %c0_i32_1 = arith.constant 0 : i32
    %c0_i32_2 = arith.constant 0 : i32
    return %arg0, %c0_i32, %c0_i32_0, %c0_i32_1 : i32, i32, i32, i32
  }
}

</mosaic_0001>

<bundles_post_ra>
// kernel: tpu_custom_call.1
= control target key start
LH: loop header
LB: loop body
LE: loop exit
PB: predicated region body
PF: predicated region fallthrough
CT: control target
= control target key end

     0   :  { %s1310_s0 = inlined_call_operand.hbm [shape: f32[2,4,16,16], index: 0, kind: input, shape index: {}]   ;;  %s1311_s1 = inlined_call_operand.vmem [shape: f32[36], index: 1, kind: input, shape index: {}]   ;;  %s1312_s2 = inlined_call_operand.<no memory space> [shape: f32[1], index: 2, kind: input, shape index: {}]   ;;  %s1313_s3 = inlined_call_operand.hbm [shape: f32[2,1,16,16], index: 3, kind: output, shape index: {}]  }
   0x1   :  { %1328 = sst [smem:[#allocation23_spill]] %s1310_s0 }
   0x2   :  { %1329 = sst [smem:[#allocation24_spill]] %s1311_s1 }
   0x3   :  { %8 = sst [smem:[#allocation2]] %s1312_s2 }
   0x4   :  { %9 = vsyncpa [#allocation4], 0 }
   0x5   :  { %11 = vsyncpa [#allocation4 + $0x1], 0 }
   0x6   :  { %12 = vsyncpa [#allocation6], 0 }
   0x7   :  { %13 = vsyncpa [#allocation5], 0 }
   0x8   :  { %15 = vsyncpa [#allocation5 + $0x1], 0  ;;  %s966_s14 = smov 0   ;;  %s968_s15 = smov 0  }
   0x9   :  { %s970_s16 = smov 0   ;;  %s972_s17 = smov 0  }
   0xa   :  { %s974_s18 = smov 0   ;;  %s976_s19 = smov 0  }
   0xb   :  { %s978_s20 = smov 0   ;;  %s980_s2 = smov 0  }
   0xc   :  { %s982_s21 = smov 0   ;;  %s984_s22 = smov 0  }
   0xd   :  { %s986_s23 = smov 0  }
   0xe LB: > { %1330 = sst [smem:[#allocation12_spill]] %s882_s14  ;;  %s579_s24 = sadd.s32 4294967295, %s922_s23   ;;  %s922_s23 = sphi %s986_s23, %s21_s23   ;;  %s918_s22 = sphi %s984_s22, %s1372_s22   ;;  %s914_s21 = sphi %s982_s21, %s1367_s21   ;;  %s910_s2 = sphi %s980_s2, %s1366_s2   ;;  %s906_s20 = sphi %s978_s20, %s1365_s20   ;;  %s902_s19 = sphi %s976_s19, %s1364_s19   ;;  %s898_s18 = sphi %s974_s18, %s1363_s18   ;;  %s894_s17 = sphi %s972_s17, %s1362_s17   ;;  %s890_s16 = sphi %s970_s16, %s1371_s16   ;;  %s886_s15 = sphi %s968_s15, %s1370_s15   ;;  %s882_s14 = sphi %s966_s14, %s1369_s14  }
   0xf   : > { %1331 = sst [smem:[#allocation13_spill]] %s898_s18  ;;  %s580_s25 = sadd.s32 4294967294, %s922_s23  }
  0x10   : > { %1332 = sst [smem:[#allocation14_spill]] %s902_s19  ;;  %p49_p0 = scmp.ne.s32.totalorder %s902_s19, %s898_s18 }
  0x11   : > { %1333 = sst [smem:[#allocation15_spill]] %s914_s21  ;;  %p50_p1 = scmp.eq.s32.totalorder %s922_s23, 0 }
  0x12   : > { %1334 = sst [smem:[#allocation16_spill]] %s918_s22  ;;  %p55_p2 = scmp.ne.s32.totalorder %s898_s18, %s894_s17 }
  0x13   : > { %1335 = sst [smem:[#allocation17_spill]] %s922_s23  ;;  %p1026_p3 = scmp.eq.s32.totalorder %s579_s24, 0 }
  0x14   : > { %p1031_p4 = por %p50_p1, %p49_p0  ;;  %p120_p5 = scmp.ne.s32.totalorder %s890_s16, %s886_s15 }
  0x15   : > { %p1039_p6 = por %p1026_p3, %p55_p2  ;;  %p121_p7 = scmp.eq.s32.totalorder %s579_s24, 3 }
  0x16   : > { %p126_p8 = scmp.ne.s32.totalorder %s886_s15, %s882_s14  ;;  %p127_p9 = scmp.eq.s32.totalorder %s580_s25, 3 }
  0x17   : > { %s1338_s30 = scalar_select %p1039_p6, 1, 0 }
  0x18   : > { %p1045_p10 = por %p121_p7, %p120_p5  ;;  %p581_p11 = scmp.ge.s32.totalorder %s922_s23, 1 }
  0x19   : > { %p1050_p12 = por %p127_p9, %p126_p8  ;;  %p134_p13 = scmp.lt.s32.totalorder %s922_s23, 5 }
  0x1a   : > { %s1339_s4 = scalar_select %p1045_p10, 1, 0 }
  0x1b   : > { %s1340_s5 = scalar_select %p1050_p12, 1, 0 }
  0x1c   : > { %s1342_s1 = sld [smem:[#allocation24_spill]]  ;;  %p1058_p0 = pnand %p581_p11, %p134_p13 }
  0x1d   : > { %1341 = sst [smem:[#allocation18_spill]] %s1340_s5  ;;  %p631_p2 = scmp.lt.s32.totalorder %s922_s23, 4 }
  0x1e   : > { %s1343_s9 = scalar_select %p1058_p0, 1, 0 }
  0x1f   : > { %p618_p1 = pneg %p1058_p0  ;;  %p1069_p7 = pnand %p631_p2, %p1031_p4 }
  0x21   : > { %p619_p5 = pnand %p618_p1, %p1026_p3 }
  0x22   : > { %s147_s8 = sshll.u32 %s1342_s1, 4  ;;  %s148_s8 = int_to_ptr.vmem [resolvable:$true] %s147_s8 }
  0x23   : > { %s747_s11 = scalar_lea.vmem %s148_s8, 16  ;;  %p749_p9 = pneg %p619_p5 }
  0x24   : > { %p748_p8 = scmp.ne.s32.totalorder %s148_s8, %s747_s11  ;;  %p755_p13 = scmp.lt.s32.totalorder %s148_s8, %s148_s8 }
  0x25   : > { %p756_p10 = scmp.lt.s32.totalorder %s747_s11, %s747_s11 }
  0x26   : > { %p750_p12 = pnand %p749_p9, %p748_p8 }
  0x27   : > { %p757_p6 = por %p756_p10, %p755_p13 }
  0x28   : > { %p751_p11 = pneg %p750_p12 }
  0x2a   : > { %p758_p0 = pnand %p757_p6, %p751_p11 }
  0x2c   : > { %761 = shalt.err (!%p758_p0)
}
  0x2d   : > { %s932_s12 = smov [#allocation7]   ;;  %s30_s13 = sadd.s32 1, %s914_s21 }
  0x2e   : > { %621 = dma.vmem_to_smem (!%p619_p5), %s148_s8, 16, %s932_s12, [#allocation6]  }
  0x2f   : > { %s33_s17 = sadd.s32 1, %s918_s22  ;;  %p31_p4 = scmp.ge.s32.totalorder %s30_s13, 2 }
  0x30   : > { %s161_s24 = sand.u32 1, %s902_s19   ;;  %s608_s6 = sshll.u32 %s914_s21, 2 }
  0x31   : > { %s584_s25 = sshll.u32 %s161_s24, 5  ;;  %s1374_s13 = smov (%p31_p4, %s30_s13), 0 }
  0x32   : > { %1345 = sst [smem:[#allocation19_spill]] %s1374_s13  ;;  %s1376_s17 = smov (!%p31_p4, %s33_s17), %s918_s22 }
  0x33   : > { %s38_s29 = ssub.s32 %s914_s21, %s1374_s13  ;;  %p35_p6 = scmp.ge.s32.totalorder %s1376_s17, 2 }
  0x34   : > { %s587_s7 = sshll.u32 %s918_s22, 3  ;;  %s165_s8 = scalar_lea.vmem [#allocation3], %s584_s25 }
  0x35   : > { %s175_s11 = sshll.u32 %s165_s8, 4  ;;  %s1378_s17 = smov (%p35_p6, %s1376_s17), 0  ;;  %s1085_s11 = int_to_ptr.vmem [resolvable:$true] %s175_s11 }
  0x36   : > { %1346 = sst [smem:[#allocation20_spill]] %s1378_s17  ;;  %s172_s12 = sadd.s32 %s608_s6, %s587_s7 }
  0x37   : > { %s37_s26 = ssub.s32 %s918_s22, %s1378_s17  ;;  %s588_s28 = sshll.u32 %s172_s12, 7 }
  0x38   : > { %s39_s1 = sor.u32 %s38_s29, %s37_s26  ;;  %p108_p10 = scmp.eq.s32.totalorder %s37_s26, 0 }
  0x39   : > { %p40_p12 = scmp.eq.s32.totalorder %s39_s1, 0  ;;  %s1347_s0 = sld [smem:[#allocation23_spill]] }
  0x3a   : > { %s1348_s25 = sadd.s32 1, %s890_s16  ;;  %s1350_s14 = sadd.s32 1, %s902_s19 }
  0x3b   : > { %s1095_s8 = scalar_select %p108_p10, %s890_s16, %s1348_s25  }
  0x3c   : > { %s1100_s23 = scalar_select %p40_p12, %s902_s19, %s1350_s14  }
  0x3d   : > { %1349 = sst [smem:[#allocation21_spill]] %s1095_s8  ;;  %s162_s6 = scalar_lea.sflag [#allocation4], %s161_s24 }
  0x3e   : > { %1351 = sst [smem:[#allocation22_spill]] %s1100_s23  ;;  %p764_p0 = pneg %p1069_p7 }
  0x3f   : > { %s174_s5 = scalar_lea.hbm %s1347_s0, %s588_s28  ;;  %s775_s7 = scalar_lea.vmem %s1085_s11, 512 }
  0x40   : > { %p776_p1 = scmp.ne.s32.totalorder %s1085_s11, %s775_s7  ;;  %s933_s29 = smov [#allocation3]  }
  0x41   : > { %s780_s26 = sshll.u32 %s933_s29, 4  ;;  %s781_s26 = int_to_ptr.vmem [resolvable:$false] %s780_s26 }
  0x42   : > { %p778_p2 = pnand %p776_p1, %p764_p0  ;;  %s782_s1 = scalar_lea.vmem %s781_s26, 1024 }
  0x43   : > { %p783_p8 = scmp.lt.s32.totalorder %s1085_s11, %s781_s26  ;;  %p784_p9 = scmp.lt.s32.totalorder %s782_s1, %s775_s7 }
  0x44   : > { %p779_p5 = pneg %p778_p2 }
  0x45   : > { %p785_p11 = por %p784_p9, %p783_p8 }
  0x47   : > { %p786_p13 = pnand %p785_p11, %p779_p5 }
  0x49   : > { %789 = shalt.err (!%p786_p13)
}
  0x4a   : > { %s934_s21 = smov 128   ;;  %s935_s14 = smov 8  }
  0x4b   : > { %625 = dma.hbm_to_vmem [thread:$0]  (!%p1069_p7), %s174_s5, 512, %s1085_s11, %s162_s6, %s934_s21, %s934_s21, %s935_s14  }
  0x4c   : > { %p1352_p4 = scmp.ne.s32.totalorder %s1343_s9, 0 }
  0x4d   : > { %s189_s28 = sand.u32 (!%p1352_p4), 1, %s898_s18   ;;  %p1353_p6 = scmp.ne.s32.totalorder (!%p1352_p4), %s1338_s30, 0 }
  0x4e   : > { %187 = sbr.rel (%p1352_p4) target bundleno = 413 (0x19d), region = 32  ;;  %s590_s13 = sshll.u32 (!%p1352_p4), %s189_s28, 5 }
  0x4f   : > { %s190_s24 = scalar_lea.sflag (!%p1352_p4), [#allocation4], %s189_s28  ;;  %s1113_s12 = scalar_lea.vmem (!%p1352_p4), [#allocation3], %s590_s13 }
  0x53   : > { %869 = dma.done.wait (%p1353_p6), %s190_s24, 512  }
  0x54   : > { %871 = vsyncadd (%p1353_p6), %s190_s24, 4294966784 }
  0x55   : > { %873 = dma.done.wait (%p1026_p3), [#allocation6], 16  }
  0x56   : > { %875 = vsyncadd (%p1026_p3), [#allocation6], 4294967280 }
  0x57   : > { %202 = sfence }
  0x58   : > { %s1323_s5 = sand.u32 1, %s886_s15   ;;  %p594_p7 = scmp.ne.s32.totalorder %s906_s20, 0 }
  0x59   : > { %s592_s10 = sshll.u32 %s1323_s5, 4  ;;  %s227_s30 = sld [smem:[#allocation2]] (!%p594_p7) }
  0x5a   : > { %s1127_s11 = scalar_lea.vmem [#allocation8], %s592_s10  ;;  %226 = sbr.rel (%p594_p7) target bundleno = 97 (0x61), region = 44 }
  0x5f   : > { %vm230_vm0 = vcmask 130048   ;;  %v228_v0 = vstv %s227_s30 }
  0x60   : > { %231 = vst.msk [vmem:[%s1127_s11] sm:$0xff] %vm230_vm0, %v228_v0  ;;  %232 = vst.msk [vmem:[%s1127_s11 + $0x8] sm:$0xff] %vm230_vm0, %v228_v0 }
  0x61 PF: > { %s233_s27 = smul.u32 18, %s906_s20 }
  0x63   : > { %s1133_s25 = sld [smem:[#allocation7 + %s233_s27]]  ;;  %s235_s6 = sadd.s32 1, %s233_s27 }
  0x64   : > { %s1135_s7 = sld [smem:[#allocation7 + %s235_s6]]  ;;  %s237_s29 = sadd.s32 2, %s233_s27 }
  0x65   : > { %s1137_s26 = sld [smem:[#allocation7 + %s237_s29]]  ;;  %s239_s1 = sadd.s32 3, %s233_s27 }
  0x66   : > { %s1139_s21 = sld [smem:[#allocation7 + %s239_s1]]  ;;  %s241_s14 = sadd.s32 4, %s233_s27 }
  0x67   : > { %s1141_s28 = sld [smem:[#allocation7 + %s241_s14]]  ;;  %s243_s13 = sadd.s32 5, %s233_s27 }
  0x68   : > { %s1143_s24 = sld [smem:[#allocation7 + %s243_s13]]  ;;  %s245_s10 = sadd.s32 6, %s233_s27 }
  0x69   : > { %s1145_s30 = sld [smem:[#allocation7 + %s245_s10]]  ;;  %s247_s5 = sadd.s32 7, %s233_s27 }
  0x6a   : > { %s1147_s9 = sld [smem:[#allocation7 + %s247_s5]]  ;;  %s249_s6 = sadd.s32 8, %s233_s27 }
  0x6b   : > { %s1149_s0 = sld [smem:[#allocation7 + %s249_s6]]  ;;  %s1151_s29 = smov 0  }
  0x6c LB: >> { %s1157_s1 = sshll.u32 %s926_s29, 3  ;;  %v294_v4 = vstv %s1139_s21  ;;  %vm283_vm1 = vcmask 1040384   ;;  %vm290_vm2 = vcmask 1046528   ;;  %v292_v9 = vstv %s1133_s25  ;;  %s256_s29 = sadd.s32 1, %s926_s29   ;;  %s926_s29 = sphi %s1151_s29, %s256_s29  }
  0x6d   : >> { %s258_s5 = scalar_lea.vmem %s1113_s12, %s1157_s1 [#allocation3]  ;;  %s596_s27 = sadd.s32 4294967295, %s1157_s1  ;;  %v308_v5 = vstv %s1141_s28  ;;  %v315_v10 = vstv %s1137_s26  ;;  %v306_v11 = vstv %s1135_s7  ;;  %vm304_vm5 = vcmask 7168  }
  0x6e   : >> { %p261_p3 = scmp.gt.s32.totalorder %s596_s27, 0  ;;  %s263_s14 = sadd.s32 8, %s1157_s1  ;;  %v259_v1 = vld [vmem:[%s258_s5] sm:$0xff]  ;;  %v317_v7 = vstv %s1143_s24  ;;  %vm327_vm6 = vcmask 121856   ;;  %vm333_vm7 = vcmask 130048  }
  0x6f   : >> { %p264_p10 = scmp.lt.s32.totalorder %s263_s14, 15  ;;  %p266_p12 = scmp.eq.s32.totalorder %s1157_s1, 0  ;;  %v281_v3 = vrot.slane %v259_v1, 7  ;;  %v295_v14 = vmul.f32 %v294_v4, %v259_v1  ;;  %v309_v15 = vmul.f32 %v308_v5, %v259_v1  ;;  %v285_v17 = vrot.slane %v259_v1, 1 }
  0x70   : >> { %s1380_s27 = smov (!%p261_p3, %s596_s27), 0  ;;  %p273_p0 = scmp.eq.s32.totalorder %s263_s14, 16  ;;  %v318_v18 = vmul.f32 %v317_v7, %v259_v1  ;;  %v297_v24 = vstv %s1145_s30  ;;  %v311_v26 = vstv %s1147_s9 }
  0x71   : >> { %s265_s13 = scalar_select %p264_p10, %s263_s14, 15  ;;  %v320_v25 = vstv %s1149_s0 }
  0x72   : >> { %s267_s10 = scalar_lea.vmem %s1113_s12, %s1380_s27 [#allocation3]  ;;  %s330_s5 = scalar_lea.vmem %s1127_s11, %s1157_s1 [#allocation8] }
  0x73   : >> { %s269_s6 = scalar_select %p266_p12, 1, 0  ;;  %v268_v2 = vld [vmem:[%s267_s10] sm:$0x1] }
  0x74   : >> { %s274_s17 = scalar_lea.vmem %s1113_s12, %s265_s13 [#allocation3]  ;;  %v331_v41 = vld [vmem:[%s330_s5] sm:$0xff]  ;;  %p253_p1 = scmp.ge.s32.totalorder %s256_s29, 2  }
  0x75   : >> { %v270_v6 = vstv %s269_s6  ;;  %s276_s22 = scalar_select %p273_p0, 1, 0  ;;  %v275_v8 = vld [vmem:[%s274_s17] sm:$0x1] }
  0x76   : >> { %vm271_vm3 = vcmp.eq.s32.totalorder %v270_v6, 1  ;;  %s937_s17 = smov 127   ;;  %s1354_s27 = sshll.u32 (%p253_p1), %s906_s20, 1 }
  0x77   : >> { %v272_v12 = vsel %vm271_vm3, 0.0, %v268_v2  ;;  %v277_v13 = vstv %s276_s22  ;;  %s936_s22 = smov 1   ;;  %s335_s14 = sadd.s32 (%p253_p1), 1, %s1354_s27 }
  0x78   : >> { %vm278_vm4 = vcmp.eq.s32.totalorder %v277_v13, 1  ;;  %v284_v16 = vsel %vm283_vm1, %v272_v12, %v281_v3  ;;  %s336_s1 = smul.u32 (%p253_p1), 9, %s335_s14  ;;  %s1205_s21 = smov (%p253_p1), 0  }
  0x79   : >> { %v279_v19 = vsel %vm278_vm4, 0.0, %v275_v8  ;;  %v293_v20 = vmul.f32 %v292_v9, %v284_v16  ;;  %v316_v21 = vmul.f32 %v315_v10, %v284_v16  ;;  %v307_v22 = vmul.f32 %v306_v11, %v284_v16 }
  0x7a   : >> { %v288_v23 = vrot.slane %v279_v19, 1  ;;  %s1187_s13 = sld [smem:[#allocation7 + %s336_s1]] (%p253_p1)  ;;  %s338_s10 = sadd.s32 (%p253_p1), 1, %s336_s1 }
  0x7b   : >> { %v296_v27 = vadd.f32 %v295_v14, %v293_v20  ;;  %v310_v28 = vadd.f32 %v309_v15, %v307_v22  ;;  %v319_v31 = vadd.f32 %v318_v18, %v316_v21  ;;  %s1189_s6 = sld [smem:[#allocation7 + %s338_s10]] (%p253_p1)  ;;  %s342_s23 = sadd.s32 (%p253_p1), 3, %s336_s1 }
  0x7c   : >> { %v291_v29 = vsel %vm290_vm2, %v285_v17, %v288_v23  ;;  %s344_s19 = sadd.s32 (%p253_p1), 4, %s336_s1  ;;  %s346_s29 = sadd.s32 (%p253_p1), 5, %s336_s1 }
  0x7d   : >> { %v298_v30 = vmul.f32 %v297_v24, %v291_v29  ;;  %v321_v32 = vmul.f32 %v320_v25, %v291_v29  ;;  %v312_v33 = vmul.f32 %v311_v26, %v291_v29  ;;  %s1195_s18 = sld [smem:[#allocation7 + %s344_s19]] (%p253_p1)  ;;  %s348_s0 = sadd.s32 (%p253_p1), 6, %s336_s1 }
  0x7e   : > { %s1197_s8 = sld [smem:[#allocation7 + %s346_s29]] (%p253_p1)  ;;  %s350_s9 = sadd.s32 (%p253_p1), 7, %s336_s1 }
  0x7f   : >> { %v299_v34 = vadd.f32 %v298_v30, %v296_v27  ;;  %v313_v35 = vadd.f32 %v312_v33, %v310_v28  ;;  %v322_v36 = vadd.f32 %v321_v32, %v319_v31  ;;  %s1199_s20 = sld [smem:[#allocation7 + %s348_s0]] (%p253_p1)  ;;  %s352_s7 = sadd.s32 (%p253_p1), 8, %s336_s1 }
  0x80   : > { %s1201_s25 = sld [smem:[#allocation7 + %s350_s9]] (%p253_p1) }
  0x81   : >> { %301 = vrot.lane.b32.xlu0 %v299_v34, %s936_s22  ;;  %s340_s22 = sadd.s32 (%p253_p1), 2, %s336_s1  ;;  %s1203_s26 = sld [smem:[#allocation7 + %s352_s7]] (%p253_p1) }
  0x85   : >> { %324 = vrot.lane.b32.xlu0 %v322_v36, %s937_s17  ;;  %s1191_s17 = sld [smem:[#allocation7 + %s340_s22]] (%p253_p1) }
  0xf3   : >> { %v302_v37 = vpop.permute.xlu0 %301 }
  0xf4   : >> { %v305_v38 = vsel %vm304_vm5, 0.0, %v302_v37 }
  0xf5   : >> { %v314_v39 = vadd.f32 %v313_v35, %v305_v38 }
  0xf7   : >> { %v325_v40 = vpop.permute.xlu0 %324 }
  0xf8   : >> { %v328_v42 = vsel %vm327_vm6, %v325_v40, 0.0 }
  0xf9   : >> { %v329_v43 = vadd.f32 %v328_v42, %v314_v39  ;;  %255 = sbr.rel (!%p253_p1) target bundleno = 108 (0x6c), region = 108 }
  0xfb   : >> { %v332_v44 = vadd.f32 %v331_v41, %v329_v43 }
  0xfd   : >> { %334 = vst.msk [vmem:[%s330_s5] sm:$0xff] %vm333_vm7, %v332_v44  ;;  %s1193_s5 = sld [smem:[#allocation7 + %s342_s23]] (%p253_p1) }
  0xfe LB: >> { %s1211_s19 = sshll.u32 %s930_s21, 3  ;;  %v414_v49 = vstv %s1195_s18  ;;  %v423_v51 = vstv %s1197_s8  ;;  %v398_v53 = vstv %s1187_s13  ;;  %v421_v54 = vstv %s1191_s17  ;;  %s938_s22 = smov 1   ;;  %s930_s21 = sphi %s1205_s21, %s359_s21  }
  0xff   : >> { %s509_s23 = scalar_lea.vmem %s1113_s12, %s1211_s19 [#allocation3]  ;;  %s600_s28 = sadd.s32 4294967295, %s1211_s19  ;;  %v412_v55 = vstv %s1189_s6  ;;  %v403_v4 = vstv %s1199_s20  ;;  %v426_v5 = vstv %s1203_s26  ;;  %v417_v6 = vstv %s1201_s25 }
 0x100   : >> { %p365_p2 = scmp.gt.s32.totalorder %s600_s28, 0  ;;  %s367_s24 = sadd.s32 8, %s1211_s19  ;;  %v599_v45 = vld [vmem:[%s509_s23 + $0x10] sm:$0xff] }
 0x101   : >> { %p368_p5 = scmp.lt.s32.totalorder %s367_s24, 15  ;;  %p370_p8 = scmp.eq.s32.totalorder %s1211_s19, 0  ;;  %v387_v47 = vrot.slane %v599_v45, 7  ;;  %v415_v59 = vmul.f32 %v599_v45, %v414_v49  ;;  %v391_v61 = vrot.slane %v599_v45, 1  ;;  %v424_v62 = vmul.f32 %v599_v45, %v423_v51 }
 0x102   : >> { %s1382_s28 = smov (!%p365_p2, %s600_s28), 0  ;;  %p378_p9 = scmp.eq.s32.totalorder %s367_s24, 16 }
 0x103   : >> { %s369_s30 = scalar_select %p368_p5, %s367_s24, 15  ;;  %v400_v48 = vstv %s1193_s5 }
 0x104   : >> { %s511_s27 = scalar_lea.vmem %s1113_s12, %s1382_s28 [#allocation3]  ;;  %v401_v58 = vmul.f32 %v599_v45, %v400_v48  ;;  %s939_s29 = smov 127  }
 0x105   : >> { %s374_s14 = scalar_select %p370_p8, 1, 0  ;;  %v601_v46 = vld [vmem:[%s511_s27 + $0x10] sm:$0x1] }
 0x106   : >> { %s513_s1 = scalar_lea.vmem %s1113_s12, %s369_s30 [#allocation3]  ;;  %s436_s0 = scalar_lea.vmem %s1127_s11, %s1211_s19 [#allocation8] }
 0x107   : >> { %v375_v50 = vstv %s374_s14  ;;  %s382_s10 = scalar_select %p378_p9, 1, 0  ;;  %v602_v52 = vld [vmem:[%s513_s1 + $0x10] sm:$0x1]  ;;  %v437_v21 = vld [vmem:[%s436_s0] sm:$0xff] }
 0x108   : >> { %vm376_vm8 = vcmp.eq.s32.totalorder %v375_v50, 1  ;;  %s359_s21 = sadd.s32 1, %s930_s21  }
 0x109   : >> { %v377_v56 = vsel %vm376_vm8, 0.0, %v601_v46  ;;  %v383_v57 = vstv %s382_s10  ;;  %p356_p11 = scmp.ge.s32.totalorder %s359_s21, 2  }
 0x10a   : >> { %vm384_vm9 = vcmp.eq.s32.totalorder %v383_v57, 1  ;;  %v390_v60 = vsel %vm283_vm1, %v377_v56, %v387_v47  ;;  %s609_s9 = sshll.u32 (%p356_p11), %s910_s2, 8  ;;  %s455_s28 = sshll.u32 (%p356_p11), %s1127_s11, 4  ;;  %s1246_s28 = int_to_ptr.vmem [resolvable:$true] %s455_s28 }
 0x10b   : >> { %v385_v63 = vsel %vm384_vm9, 0.0, %v602_v52  ;;  %v399_v0 = vmul.f32 %v398_v53, %v390_v60  ;;  %v422_v1 = vmul.f32 %v421_v54, %v390_v60  ;;  %v413_v2 = vmul.f32 %v412_v55, %v390_v60  ;;  %s1243_s23 = scalar_lea.hbm (%p356_p11), %s1313_s3, %s609_s9  ;;  %s1355_s24 = sand.u32 (%p356_p11), 1, %s886_s15  }
 0x10c   : >> { %v394_v3 = vrot.slane %v385_v63, 1  ;;  %s1250_s30 = scalar_lea.sflag (%p356_p11), [#allocation5], %s1355_s24  ;;  %s790_s21 = scalar_lea.vmem (%p356_p11), %s1246_s28, 256 }
 0x10d   : >> { %v402_v7 = vadd.f32 %v401_v58, %v399_v0  ;;  %v416_v8 = vadd.f32 %v415_v59, %v413_v2  ;;  %v425_v11 = vadd.f32 %v424_v62, %v422_v1  ;;  %p791_p13 = scmp.ne.s32.totalorder (%p356_p11), %s1246_s28, %s790_s21  ;;  %p1356_p4 = scmp.ne.s32.totalorder (%p356_p11), %s1339_s4, 0 }
 0x10e   : >> { %v397_v9 = vsel %vm290_vm2, %v391_v61, %v394_v3  ;;  %s940_s18 = smov (%p356_p11), [#allocation8]  }
 0x10f   : >> { %v404_v10 = vmul.f32 %v403_v4, %v397_v9  ;;  %v427_v12 = vmul.f32 %v426_v5, %v397_v9  ;;  %v418_v13 = vmul.f32 %v417_v6, %v397_v9  ;;  %p792_p6 = pnand (%p356_p11), %p791_p13, %p1356_p4  ;;  %s794_s2 = sshll.u32 (%p356_p11), %s940_s18, 4  ;;  %s795_s2 = int_to_ptr.vmem [resolvable:$false] %s794_s2 }
 0x110   : > { %s796_s8 = scalar_lea.vmem (%p356_p11), %s795_s2, 512  ;;  %p797_p3 = scmp.lt.s32.totalorder (%p356_p11), %s1246_s28, %s795_s2 }
 0x111   : >> { %v405_v14 = vadd.f32 %v404_v10, %v402_v7  ;;  %v419_v15 = vadd.f32 %v418_v13, %v416_v8  ;;  %v428_v16 = vadd.f32 %v427_v12, %v425_v11  ;;  %p793_p7 = pneg (%p356_p11), %p792_p6  ;;  %p798_p10 = scmp.lt.s32.totalorder (%p356_p11), %s796_s8, %s790_s21 }
 0x113   : >> { %407 = vrot.lane.b32.xlu0 %v405_v14, %s938_s22  ;;  %p799_p12 = por (%p356_p11), %p798_p10, %p797_p3 }
 0x115   : > { %p800_p0 = pnand (%p356_p11), %p799_p12, %p793_p7 }
 0x117   : >> { %430 = vrot.lane.b32.xlu0 %v428_v16, %s939_s29 }
 0x185   : >> { %v408_v17 = vpop.permute.xlu0 %407 }
 0x186   : >> { %v411_v18 = vsel %vm304_vm5, 0.0, %v408_v17 }
 0x187   : >> { %v420_v19 = vadd.f32 %v419_v15, %v411_v18 }
 0x189   : >> { %v431_v20 = vpop.permute.xlu0 %430 }
 0x18a   : >> { %v434_v22 = vsel %vm327_vm6, %v431_v20, 0.0 }
 0x18b   : >> { %v435_v23 = vadd.f32 %v434_v22, %v420_v19  ;;  %358 = sbr.rel (!%p356_p11) target bundleno = 254 (0xfe), region = 119 }
 0x18d   : >> { %v438_v24 = vadd.f32 %v437_v21, %v435_v23 }
 0x18f   : >> { %440 = vst.msk [vmem:[%s436_s0] sm:$0xff] %vm333_vm7, %v438_v24 }
 0x190   : > { %803 = shalt.err (!%p800_p0)
}
 0x191   : > { %s804_s12 = scalar_lea.hbm %s1243_s23, 256  ;;  %s808_s6 = scalar_lea.hbm %s1313_s3, 512 }
 0x192   : > { %p805_p1 = scmp.ne.s32.totalorder %s1243_s23, %s804_s12  ;;  %p809_p8 = scmp.lt.s32.totalorder %s1243_s23, %s1313_s3 }
 0x193   : > { %p810_p9 = scmp.lt.s32.totalorder %s808_s6, %s804_s12 }
 0x194   : > { %p806_p2 = pnand %p805_p1, %p1356_p4 }
 0x195   : > { %p811_p11 = por %p810_p9, %p809_p8 }
 0x196   : > { %p807_p5 = pneg %p806_p2 }
 0x198   : > { %p812_p13 = pnand %p811_p11, %p807_p5 }
 0x19a   : > { %815 = shalt.err (!%p812_p13)
}
 0x19b   : > { %s941_s20 = smov 128   ;;  %s942_s25 = smov 8  }
 0x19c   : > { %616 = dma.vmem_to_hbm [thread:$0]  (%p1356_p4), %s1246_s28, 256, %s1243_s23, %s1250_s30, %s941_s20, %s941_s20, %s942_s25  }
 0x19d PF: > { %s1357_s26 = sld [smem:[#allocation17_spill]] }
 0x19e   : > { %s1358_s27 = sld [smem:[#allocation12_spill]] }
 0x19f   : > { %s1359_s14 = sld [smem:[#allocation18_spill]] }
 0x1a3   : > { %p633_p6 = scmp.ge.s32.totalorder %s1357_s26, 2 }
 0x1a4   : > { %s470_s1 = sand.u32 1, %s1358_s27  }
 0x1a5   : > { %p1360_p7 = scmp.ne.s32.totalorder %s1359_s14, 0  ;;  %s471_s10 = scalar_lea.sflag [#allocation5], %s470_s1 }
 0x1a7   : > { %p627_p3 = pnand %p633_p6, %p1360_p7 }
 0x1a9   : > { %p628_p10 = pneg %p627_p3 }
 0x1ab   : > { %877 = dma.done.wait (%p628_p10), %s471_s10, 256  }
 0x1ac   : > { %879 = vsyncadd (%p628_p10), %s471_s10, 4294967040  ;;  %s21_s23 = sadd.s32 1, %s1357_s26   ;;  %s1361_s22 = sld [smem:[#allocation21_spill]] }
 0x1ad   : > { %p18_p12 = scmp.ge.s32.totalorder %s21_s23, 6   ;;  %s1362_s17 = sld [smem:[#allocation13_spill]] }
 0x1ae   : > { %s1363_s18 = sld [smem:[#allocation14_spill]]  ;;  %s1369_s14 = smov %s886_s15 }
 0x1af   : > { %s1364_s19 = sld [smem:[#allocation22_spill]]  ;;  %s1370_s15 = smov %s890_s16 }
 0x1b0   : > { %s1365_s20 = sld [smem:[#allocation15_spill]] }
 0x1b1   : > { %s1366_s2 = sld [smem:[#allocation16_spill]] }
 0x1b2   : > { %s1367_s21 = sld [smem:[#allocation19_spill]]  ;;  %s1371_s16 = smov %s1361_s22 }
 0x1b3   : > { %s1368_s4 = sld [smem:[#allocation20_spill]] }
 0x1b5   :  { %20 = sbr.rel (!%p18_p12) target bundleno = 14 (0xe), region = 130 }
 0x1b9   : > { %s1372_s22 = smov %s1368_s4 }
 0x1ba   :  { %476 = vsyncpa [#allocation4], 1 }
 0x1bb   :  { %478 = vsyncpa [#allocation4 + $0x1], 1 }
 0x1bc   :  { %479 = vsyncpa [#allocation5], 1 }
 0x1bd   :  { %481 = vsyncpa [#allocation5 + $0x1], 1 }
 0x1be   :  { %482 = vsyncpa [#allocation6], 1 }
 0x1bf   :  { %484 = vsyncpa [#allocation6 + $0x1], 1 }

</bundles_post_ra>
